<compile_context>
chip_gen: v6e
topology: v6e:2x2x1
jax: 0.10.0
libtpu: 0.0.40
codegen_flags: <defaults>
</compile_context>

<pallas_src>
import jax
import jax.numpy as jnp
from jax.experimental import pallas as pl
from jax.experimental.pallas import tpu as pltpu


def _round_up(n: int, m: int) -> int:
    return ((n + m - 1) // m) * m


# ------------------------------- kernels ------------------------------------
def autoencoder_kernel(x_ref, w1_ref, b1_ref, w2_ref, b2_ref, enc_ref, dec_ref):
    """Fused encoder+decoder forward for one batch tile (all operands in VMEM)."""
    x = x_ref[...]                                            # [tb, D_in_p] (bf16)

    # Encoder: Linear + ReLU, f32 accumulation on the MXU; bias is already f32.
    h = jnp.dot(x, w1_ref[...], preferred_element_type=jnp.float32)
    h = jnp.maximum(h + b1_ref[...], 0.0)                     # broadcast [1, H_p]

    # Cast once; reuse for the store AND the second matmul (no duplicate pack).
    enc_lp = h.astype(enc_ref.dtype)
    enc_ref[...] = enc_lp                                     # lane-dense store

    # Decoder: Linear + ReLU, bf16 operands, f32 accumulation.
    d = jnp.dot(enc_lp, w2_ref[...], preferred_element_type=jnp.float32)
    dec_ref[...] = jnp.maximum(d + b2_ref[...], 0.0).astype(dec_ref.dtype)


def autoencoder_decode_only_kernel(x_ref, w1_ref, b1_ref, w2_ref, b2_ref, dec_ref):
    """Same forward but skips the `encoded` store (when only decoded is used)."""
    x = x_ref[...]
    h = jnp.dot(x, w1_ref[...], preferred_element_type=jnp.float32)
    h = jnp.maximum(h + b1_ref[...], 0.0)
    enc_lp = h.astype(w2_ref.dtype)
    d = jnp.dot(enc_lp, w2_ref[...], preferred_element_type=jnp.float32)
    dec_ref[...] = jnp.maximum(d + b2_ref[...], 0.0).astype(dec_ref.dtype)


# ----------------------------- parameter prep -------------------------------
def init_params(key, input_size, hidden_units, dtype=jnp.bfloat16):
    """Init mimicking nn.Linear's uniform(-1/sqrt(fan_in), 1/sqrt(fan_in))."""
    k1, k2, k3, k4 = jax.random.split(key, 4)
    bound1 = 1.0 / float(input_size) ** 0.5
    bound2 = 1.0 / float(hidden_units) ** 0.5
    # Weights stored pre-transposed: [in, out].
    w1_t = jax.random.uniform(k1, (input_size, hidden_units), jnp.float32, -bound1, bound1)
    b1 = jax.random.uniform(k2, (hidden_units,), jnp.float32, -bound1, bound1)
    w2_t = jax.random.uniform(k3, (hidden_units, input_size), jnp.float32, -bound2, bound2)
    b2 = jax.random.uniform(k4, (input_size,), jnp.float32, -bound2, bound2)
    return w1_t.astype(dtype), b1, w2_t.astype(dtype), b2


def prepare_params(w1_t, b1, w2_t, b2):
    """Pad/cast weights & biases ONCE (hoisted out of the per-call path).

    Feature dims are padded to multiples of 128 (lane-dense, unmasked stores);
    zero padding is numerically exact for Linear+ReLU. Biases are kept in f32
    (they are tiny [1, F] rows) so the kernel does only the broadcast-add.
    """
    d_in, h = w1_t.shape
    d_in_p, h_p = _round_up(d_in, 128), _round_up(h, 128)
    w1_p = jnp.pad(w1_t, ((0, d_in_p - d_in), (0, h_p - h)))
    w2_p = jnp.pad(w2_t, ((0, h_p - h), (0, d_in_p - d_in)))
    b1_p = jnp.pad(b1.astype(jnp.float32).reshape(1, -1), ((0, 0), (0, h_p - h)))
    b2_p = jnp.pad(b2.astype(jnp.float32).reshape(1, -1), ((0, 0), (0, d_in_p - d_in)))
    return {"w1": w1_p, "b1": b1_p, "w2": w2_p, "b2": b2_p,
            "d_in": d_in, "h": h, "d_in_p": d_in_p, "h_p": h_p}


# -------------------------------- wrapper ------------------------------------
def _pick_batch_tile(batch: int) -> int:
    # Small batch: a single grid step (single-TC v5e/v6e pay per-step overhead
    # serially). Large batch: 256-row tiles -> full MXU M-occupancy on v6e/v7x
    # and >=2 "parallel" steps so both v7x TensorCores engage.
    if batch <= 256:
        return max(8, _round_up(batch, 8))
    return 256


def autoencoder_forward(x, params, *, return_encoded=True, tb=None):
    """Run the fused autoencoder Pallas kernel.

    x      : [B, D_in]
    params : output of `prepare_params` (padded weights, f32 biases).
    returns (encoded [B, H], decoded [B, D_in]) or decoded only.
    """
    d_in, h = params["d_in"], params["h"]
    d_in_p, h_p = params["d_in_p"], params["h_p"]
    w1, b1, w2, b2 = params["w1"], params["b1"], params["w2"], params["b2"]

    B = x.shape[0]
    dt = x.dtype
    if tb is None:
        tb = _pick_batch_tile(B)
    tb = max(8, _round_up(tb, 8))
    b_p = _round_up(B, tb)

    # Only pad x when actually needed; otherwise pass it straight through
    # (avoids a full extra HBM round trip per call).
    if b_p != B or d_in_p != d_in:
        x_in = jnp.pad(x, ((0, b_p - B), (0, d_in_p - d_in)))
    else:
        x_in = x

    grid = (b_p // tb,)
    in_specs = [
        pl.BlockSpec((tb, d_in_p), lambda i: (i, 0)),     # x tile
        pl.BlockSpec((d_in_p, h_p), lambda i: (0, 0)),    # W1ᵀ (VMEM-resident)
        pl.BlockSpec((1, h_p), lambda i: (0, 0)),         # b1 (f32)
        pl.BlockSpec((h_p, d_in_p), lambda i: (0, 0)),    # W2ᵀ (VMEM-resident)
        pl.BlockSpec((1, d_in_p), lambda i: (0, 0)),      # b2 (f32)
    ]

    # VMEM budget from the actual footprint (Pallas double-buffers every block
    # by default), with headroom, capped v7x-safe (64 MiB physical on v7x).
    w_itemsize = jnp.dtype(w1.dtype).itemsize
    act_itemsize = jnp.dtype(dt).itemsize
    w_bytes = (d_in_p * h_p + h_p * d_in_p) * w_itemsize + (h_p + d_in_p) * 4
    tile_bytes = tb * (2 * d_in_p + h_p) * act_itemsize   # x + dec + enc tiles
    vmem_limit = 2 * (w_bytes + tile_bytes)
    vmem_limit = int(min(48 * 1024 * 1024,
                         max(8 * 1024 * 1024, vmem_limit * 5 // 4 + (2 << 20))))

    compiler_params = pltpu.CompilerParams(
        dimension_semantics=("parallel",),
        vmem_limit_bytes=vmem_limit,
    )

    if return_encoded:
        enc_p, dec_p = pl.pallas_call(
            autoencoder_kernel,
            out_shape=(
                jax.ShapeDtypeStruct((b_p, h_p), dt),
                jax.ShapeDtypeStruct((b_p, d_in_p), dt),
            ),
            grid_spec=pltpu.PrefetchScalarGridSpec(
                num_scalar_prefetch=0,
                grid=grid,
                in_specs=in_specs,
                out_specs=[
                    pl.BlockSpec((tb, h_p), lambda i: (i, 0)),
                    pl.BlockSpec((tb, d_in_p), lambda i: (i, 0)),
                ],
            ),
            compiler_params=compiler_params,
        )(x_in, w1, b1, w2, b2)
        enc = enc_p if (b_p == B and h_p == h) else enc_p[:B, :h]
        dec = dec_p if (b_p == B and d_in_p == d_in) else dec_p[:B, :d_in]
        return enc, dec

    dec_p = pl.pallas_call(
        autoencoder_decode_only_kernel,
        out_shape=jax.ShapeDtypeStruct((b_p, d_in_p), dt),
        grid_spec=pltpu.PrefetchScalarGridSpec(
            num_scalar_prefetch=0,
            grid=grid,
            in_specs=in_specs,
            out_specs=pl.BlockSpec((tb, d_in_p), lambda i: (i, 0)),
        ),
        compiler_params=compiler_params,
    )(x_in, w1, b1, w2, b2)
    return dec_p if (b_p == B and d_in_p == d_in) else dec_p[:B, :d_in]


# --------------------------------- demo --------------------------------------
if __name__ == "__main__":
    # Small, TPU-native shapes (multiples of 8 / 128 -> no pad/slice copies):
    # batch=64 (single grid step), input_size=256, hidden_units=128, dropout=0.
    B, INPUT_SIZE, HIDDEN_UNITS = 64, 256, 128

    key = jax.random.PRNGKey(0)
    kx, kp = jax.random.split(key)
    x = jax.random.normal(kx, (B, INPUT_SIZE), dtype=jnp.float32).astype(jnp.bfloat16)

    w1_t, b1, w2_t, b2 = init_params(kp, INPUT_SIZE, HIDDEN_UNITS, dtype=jnp.bfloat16)
    params = prepare_params(w1_t, b1, w2_t, b2)   # pad/cast once, reused per call

    encoded, decoded = autoencoder_forward(x, params)
    decoded_only = autoencoder_forward(x, params, return_encoded=False)
    jax.block_until_ready((encoded, decoded, decoded_only))

    # Reference in plain JAX (same math: bf16 operands, f32 accumulation/bias).
    xf = x.astype(jnp.float32)
    enc_ref = jnp.maximum(xf @ w1_t.astype(jnp.float32) + b1, 0.0)
    dec_ref = jnp.maximum(
        enc_ref.astype(jnp.bfloat16).astype(jnp.float32) @ w2_t.astype(jnp.float32) + b2,
        0.0,
    )

    assert encoded.shape == (B, HIDDEN_UNITS) and decoded.shape == (B, INPUT_SIZE)
    assert jnp.allclose(encoded.astype(jnp.float32), enc_ref, atol=2e-2, rtol=2e-2)
    assert jnp.allclose(decoded.astype(jnp.float32), dec_ref, atol=2e-2, rtol=2e-2)
    assert jnp.allclose(decoded_only.astype(jnp.float32),
                        decoded.astype(jnp.float32), atol=1e-6, rtol=1e-6)

    print("KERNEL_OK")
</pallas_src>

<mosaic_0001>
module attributes {stable_mosaic.version = 11 : i64} {
  func.func @autoencoder_kernel(%arg0: i32, %arg1: memref<64x256xbf16, #tpu.memory_space<vmem>>, %arg2: memref<256x128xbf16, #tpu.memory_space<vmem>>, %arg3: memref<1x128xf32, #tpu.memory_space<vmem>>, %arg4: memref<128x256xbf16, #tpu.memory_space<vmem>>, %arg5: memref<1x256xf32, #tpu.memory_space<vmem>>, %arg6: memref<64x128xbf16, #tpu.memory_space<vmem>>, %arg7: memref<64x256xbf16, #tpu.memory_space<vmem>>) attributes {dimension_semantics = [#tpu.dimension_semantics<parallel>], iteration_bounds = array<i64: 1>, scalar_prefetch = 0 : i64, scratch_operands = 0 : i64, tpu.core_type = #tpu.core_type<tc>, window_params = [{transform_indices = @transform_0, window_bounds = array<i64: 64, 256>}, {pipeline_mode = #tpu.pipeline_mode<synchronous>, transform_indices = @transform_1, window_bounds = array<i64: 256, 128>}, {pipeline_mode = #tpu.pipeline_mode<synchronous>, transform_indices = @transform_2, window_bounds = array<i64: 1, 128>}, {pipeline_mode = #tpu.pipeline_mode<synchronous>, transform_indices = @transform_3, window_bounds = array<i64: 128, 256>}, {pipeline_mode = #tpu.pipeline_mode<synchronous>, transform_indices = @transform_4, window_bounds = array<i64: 1, 256>}, {transform_indices = @transform_5, window_bounds = array<i64: 64, 128>}, {transform_indices = @transform_6, window_bounds = array<i64: 64, 256>}]} {
    %c0 = arith.constant 0 : index
    %c0_0 = arith.constant 0 : index
    %0 = vector.load %arg1[%c0, %c0_0] : memref<64x256xbf16, #tpu.memory_space<vmem>>, vector<64x256xbf16>
    %c0_1 = arith.constant 0 : index
    %c0_2 = arith.constant 0 : index
    %1 = vector.load %arg2[%c0_1, %c0_2] : memref<256x128xbf16, #tpu.memory_space<vmem>>, vector<256x128xbf16>
    %cst = arith.constant dense<0.000000e+00> : vector<64x128xf32>
    %2 = tpu.matmul %0, %1, %cst {dimension_numbers = #tpu.dot_dimension_numbers<[1], [0], [0], [1], [0, 0, 1, 1], [], []>} : vector<64x256xbf16>, vector<256x128xbf16>, vector<64x128xf32> -> vector<64x128xf32>
    %c0_3 = arith.constant 0 : index
    %c0_4 = arith.constant 0 : index
    %3 = vector.load %arg3[%c0_3, %c0_4] : memref<1x128xf32, #tpu.memory_space<vmem>>, vector<1x128xf32>
    %4 = vector.broadcast %3 : vector<1x128xf32> to vector<64x128xf32>
    %5 = arith.addf %2, %4 : vector<64x128xf32>
    %cst_5 = arith.constant 0.000000e+00 : f32
    %6 = vector.broadcast %cst_5 : f32 to vector<64x128xf32>
    %7 = arith.maximumf %5, %6 : vector<64x128xf32>
    %8 = arith.truncf %7 : vector<64x128xf32> to vector<64x128xbf16>
    %c0_6 = arith.constant 0 : index
    %c0_7 = arith.constant 0 : index
    %9 = vector.load %arg6[%c0_6, %c0_7] : memref<64x128xbf16, #tpu.memory_space<vmem>>, vector<64x128xbf16>
    tpu.vector_store %arg6[%c0_6, %c0_7], %8 {strides = array<i32>} : memref<64x128xbf16, #tpu.memory_space<vmem>>, vector<64x128xbf16>,
    %c0_8 = arith.constant 0 : index
    %c0_9 = arith.constant 0 : index
    %10 = vector.load %arg4[%c0_8, %c0_9] : memref<128x256xbf16, #tpu.memory_space<vmem>>, vector<128x256xbf16>
    %cst_10 = arith.constant dense<0.000000e+00> : vector<64x256xf32>
    %11 = tpu.matmul %8, %10, %cst_10 {dimension_numbers = #tpu.dot_dimension_numbers<[1], [0], [0], [1], [0, 0, 1, 1], [], []>} : vector<64x128xbf16>, vector<128x256xbf16>, vector<64x256xf32> -> vector<64x256xf32>
    %c0_11 = arith.constant 0 : index
    %c0_12 = arith.constant 0 : index
    %12 = vector.load %arg5[%c0_11, %c0_12] : memref<1x256xf32, #tpu.memory_space<vmem>>, vector<1x256xf32>
    %13 = vector.broadcast %12 : vector<1x256xf32> to vector<64x256xf32>
    %14 = arith.addf %11, %13 : vector<64x256xf32>
    %cst_13 = arith.constant 0.000000e+00 : f32
    %15 = vector.broadcast %cst_13 : f32 to vector<64x256xf32>
    %16 = arith.maximumf %14, %15 : vector<64x256xf32>
    %17 = arith.truncf %16 : vector<64x256xf32> to vector<64x256xbf16>
    %c0_14 = arith.constant 0 : index
    %c0_15 = arith.constant 0 : index
    %18 = vector.load %arg7[%c0_14, %c0_15] : memref<64x256xbf16, #tpu.memory_space<vmem>>, vector<64x256xbf16>
    tpu.vector_store %arg7[%c0_14, %c0_15], %17 {strides = array<i32>} : memref<64x256xbf16, #tpu.memory_space<vmem>>, vector<64x256xbf16>,
    return
  }
  func.func @transform_0(%arg0: i32) -> (i32, i32) {
    %c0_i32 = arith.constant 0 : i32
    %c0_i32_0 = arith.constant 0 : i32
    return %arg0, %c0_i32 : i32, i32
  }
  func.func @transform_1(%arg0: i32) -> (i32, i32) {
    %c0_i32 = arith.constant 0 : i32
    %c0_i32_0 = arith.constant 0 : i32
    %c0_i32_1 = arith.constant 0 : i32
    return %c0_i32, %c0_i32_0 : i32, i32
  }
  func.func @transform_2(%arg0: i32) -> (i32, i32) {
    %c0_i32 = arith.constant 0 : i32
    %c0_i32_0 = arith.constant 0 : i32
    %c0_i32_1 = arith.constant 0 : i32
    return %c0_i32, %c0_i32_0 : i32, i32
  }
  func.func @transform_3(%arg0: i32) -> (i32, i32) {
    %c0_i32 = arith.constant 0 : i32
    %c0_i32_0 = arith.constant 0 : i32
    %c0_i32_1 = arith.constant 0 : i32
    return %c0_i32, %c0_i32_0 : i32, i32
  }
  func.func @transform_4(%arg0: i32) -> (i32, i32) {
    %c0_i32 = arith.constant 0 : i32
    %c0_i32_0 = arith.constant 0 : i32
    %c0_i32_1 = arith.constant 0 : i32
    return %c0_i32, %c0_i32_0 : i32, i32
  }
  func.func @transform_5(%arg0: i32) -> (i32, i32) {
    %c0_i32 = arith.constant 0 : i32
    %c0_i32_0 = arith.constant 0 : i32
    return %arg0, %c0_i32 : i32, i32
  }
  func.func @transform_6(%arg0: i32) -> (i32, i32) {
    %c0_i32 = arith.constant 0 : i32
    %c0_i32_0 = arith.constant 0 : i32
    return %arg0, %c0_i32 : i32, i32
  }
}

</mosaic_0001>

<bundles_post_ra>
// kernel: tpu_custom_call.1
= control target key start
LH: loop header
LB: loop body
LE: loop exit
PB: predicated region body
PF: predicated region fallthrough
CT: control target
= control target key end

     0   :  { %12 = vsyncpa [#allocation3], 0  ;;  %s1036_s0 = inlined_call_operand.hbm [shape: bf16[64,256], index: 0, kind: input, shape index: {}]   ;;  %s1037_s1 = inlined_call_operand.hbm [shape: bf16[256,128], index: 1, kind: input, shape index: {}]   ;;  %s1038_s2 = inlined_call_operand.vmem [shape: f32[1,128], index: 2, kind: input, shape index: {}]   ;;  %s1039_s3 = inlined_call_operand.hbm [shape: bf16[128,256], index: 3, kind: input, shape index: {}]   ;;  %s1040_s4 = inlined_call_operand.vmem [shape: f32[1,256], index: 4, kind: input, shape index: {}]   ;;  %s1041_s5 = inlined_call_operand.hbm [shape: bf16[64,128], index: 5, kind: output, shape index: {0}]   ;;  %s1042_s6 = inlined_call_operand.hbm [shape: bf16[64,256], index: 6, kind: output, shape index: {1}]  }
   0x1   :  { %13 = vsyncpa [#allocation6], 0 }
   0x2   :  { %14 = vsyncpa [#allocation4], 0 }
   0x3   :  { %15 = vsyncpa [#allocation10], 0  ;;  %s955_s21 = smov [#allocation5]  }
   0x4   :  { %s33_s22 = sshll.u32 %s955_s21, 4  ;;  %s34_s22 = int_to_ptr.vmem [resolvable:$true] %s33_s22 }
   0x5   :  { %s855_s23 = scalar_lea.vmem %s34_s22, 2048  ;;  %p860_p1 = scmp.lt.s32.totalorder %s34_s22, %s34_s22 }
   0x6   :  { %p856_p0 = scmp.ne.s32.totalorder %s34_s22, %s855_s23  ;;  %p861_p2 = scmp.lt.s32.totalorder %s855_s23, %s855_s23 }
   0x8   :  { %p862_p3 = por %p861_p2, %p860_p1 }
   0xa   :  { %p863_p4 = pnand %p862_p3, %p856_p0 }
   0xc   :  { %866 = shalt.err (!%p863_p4)
}
   0xd   :  { %s956_s24 = smov 64   ;;  %s957_s25 = smov 4  }
   0xe   :  { %39 = dma.hbm_to_vmem [thread:$0]  %s1037_s1, 2048, %s34_s22, [#allocation6], %s956_s24, %s956_s24, %s957_s25  }
   0xf   :  { %s958_s28 = smov [#allocation2]  }
  0x10   :  { %s21_s29 = sshll.u32 %s958_s28, 4  ;;  %s22_s29 = int_to_ptr.vmem [resolvable:$true] %s21_s29 }
  0x11   :  { %s875_s30 = scalar_lea.vmem %s22_s29, 1024  ;;  %p880_p6 = scmp.lt.s32.totalorder %s22_s29, %s22_s29 }
  0x12   :  { %p876_p5 = scmp.ne.s32.totalorder %s22_s29, %s875_s30  ;;  %p881_p7 = scmp.lt.s32.totalorder %s875_s30, %s875_s30 }
  0x14   :  { %p882_p8 = por %p881_p7, %p880_p6 }
  0x16   :  { %p883_p9 = pnand %p882_p8, %p876_p5 }
  0x18   :  { %886 = shalt.err (!%p883_p9)
}
  0x19   :  { %s959_s7 = smov 128   ;;  %s960_s8 = smov 8  }
  0x1a   :  { %27 = dma.hbm_to_vmem [thread:$0]  %s1036_s0, 1024, %s22_s29, [#allocation3], %s959_s7, %s959_s7, %s960_s8  }
  0x1b   :  { %s961_s1 = smov [#allocation7]  }
  0x1c   :  { %s47_s11 = sshll.u32 %s961_s1, 4  ;;  %s48_s11 = int_to_ptr.vmem [resolvable:$true] %s47_s11 }
  0x1d   :  { %s895_s12 = scalar_lea.vmem %s48_s11, 2048  ;;  %p900_p11 = scmp.lt.s32.totalorder %s48_s11, %s48_s11 }
  0x1e   :  { %p896_p10 = scmp.ne.s32.totalorder %s48_s11, %s895_s12  ;;  %p901_p12 = scmp.lt.s32.totalorder %s895_s12, %s895_s12 }
  0x20   :  { %p902_p13 = por %p901_p12, %p900_p11 }
  0x22   :  { %p903_p0 = pnand %p902_p13, %p896_p10 }
  0x24   :  { %906 = shalt.err (!%p903_p0)
}
  0x25   :  { %53 = dma.hbm_to_vmem [thread:$0]  %s1039_s3, 2048, %s48_s11, [#allocation6], %s959_s7, %s959_s7, %s960_s8  }
  0x26   :  { %947 = dma.done.wait [#allocation3], 1024  }
  0x27   :  { %948 = vsyncadd [#allocation3], 4294966272 }
  0x28   :  { %949 = dma.done.wait [#allocation6], 4096  }
  0x29   :  { %950 = vsyncadd [#allocation6], 4294963200  ;;  %v795_v0 = vld [vmem:[#allocation5 + $0x78] sm:$0xff]   ;;  %v797_v2 = vld [vmem:[#allocation5 + $0x70] sm:$0xff]   ;;  %v962_v40 = vmov 0  }
  0x2a   :  { %v796_v1 = vld [vmem:[#allocation5 + $0x38] sm:$0xff]   ;;  %745 = vmatprep.subr.bf16.mxu0 %v795_v0  ;;  %v798_v3 = vld [vmem:[#allocation5 + $0x30] sm:$0xff]   ;;  %v799_v4 = vld [vmem:[#allocation5 + $0x68] sm:$0xff]   ;;  %502 = vmatprep.mubr.bf16.mxu1 %v962_v40 }
  0x2b   :  { %746 = vmatpush3.bf16.msra.mxu0 %v796_v1  ;;  %v800_v5 = vld [vmem:[#allocation5 + $0x28] sm:$0xff]   ;;  %v801_v6 = vld [vmem:[#allocation5 + $0x60] sm:$0xff]   ;;  %v803_v8 = vld [vmem:[#allocation5 + $0x58] sm:$0xff]  }
  0x2c   :  { %747 = vmatprep.subr.bf16.mxu0 %v797_v2  ;;  %v802_v7 = vld [vmem:[#allocation5 + $0x20] sm:$0xff]   ;;  %v804_v9 = vld [vmem:[#allocation5 + $0x18] sm:$0xff]   ;;  %v805_v10 = vld [vmem:[#allocation5 + $0x50] sm:$0xff]  }
  0x2d   :  { %v813_v11 = vld [vmem:[#allocation2 + $0x4] ss:$8 sps:$4 sm:$0xff]   ;;  %v806_v12 = vld [vmem:[#allocation5 + $0x10] sm:$0xff]   ;;  %v828_v19 = vld [vmem:[#allocation7 + $0x60] ss:$8 sps:$4 sm:$0xff]  }
  0x2e   :  { %281 = vmatprep.mubr.bf16.mxu0 %v813_v11  ;;  %v807_v13 = vld [vmem:[#allocation5 + $0x48] sm:$0xff]   ;;  %v823_v14 = vld [vmem:[#allocation7 + $0x74] ss:$8 sps:$4 sm:$0xff]   ;;  %v825_v15 = vld [vmem:[#allocation7 + $0x70] ss:$8 sps:$4 sm:$0xff]  }
  0x2f   :  { %748 = vmatpush3.bf16.msra.mxu0 %v798_v3  ;;  %v808_v16 = vld [vmem:[#allocation5 + $0x8] sm:$0xff]   ;;  %v809_v18 = vld [vmem:[#allocation5 + $0x40] sm:$0xff]   ;;  %470 = vmatprep.subr.bf16.mxu1 %v823_v14  ;;  %v829_v20 = vld [vmem:[#allocation7 + $0x54] ss:$8 sps:$4 sm:$0xff]  }
  0x30   :  { %749 = vmatprep.subr.bf16.mxu0 %v799_v4  ;;  %v826_v17 = vld [vmem:[#allocation7 + $0x64] ss:$8 sps:$4 sm:$0xff]   ;;  %471 = vmatpush1.bf16.msra.mxu1 %v825_v15  ;;  %v831_v22 = vld [vmem:[#allocation7 + $0x50] ss:$8 sps:$4 sm:$0xff]   ;;  %v811_v23 = vld [vmem:[#allocation2] ss:$8 sps:$4 sm:$0xff]  }
  0x31   :  { %472 = vmatprep.subr.bf16.mxu1 %v826_v17  ;;  %v810_v21 = vld [vmem:[#allocation5] sm:$0xff]   ;;  %v814_v25 = vld [vmem:[#allocation2 + $0x14] ss:$8 sps:$4 sm:$0xff]   ;;  %v816_v28 = vld [vmem:[#allocation2 + $0x10] ss:$8 sps:$4 sm:$0xff]  }
  0x32   :  { %v832_v24 = vld [vmem:[#allocation7 + $0x44] ss:$8 sps:$4 sm:$0xff]   ;;  %v834_v26 = vld [vmem:[#allocation7 + $0x40] ss:$8 sps:$4 sm:$0xff]   ;;  %v835_v27 = vld [vmem:[#allocation7 + $0x34] ss:$8 sps:$4 sm:$0xff]  }
  0x33   :  { %750 = vmatpush3.bf16.msra.mxu0 %v800_v5  ;;  %v817_v29 = vld [vmem:[#allocation2 + $0x24] ss:$8 sps:$4 sm:$0xff]   ;;  %v819_v30 = vld [vmem:[#allocation2 + $0x20] ss:$8 sps:$4 sm:$0xff]   ;;  %v820_v31 = vld [vmem:[#allocation2 + $0x34] ss:$8 sps:$4 sm:$0xff]  }
  0x34   :  { %751 = vmatprep.subr.bf16.mxu0 %v801_v6  ;;  %473 = vmatpush1.bf16.msra.mxu1 %v828_v19  ;;  %v822_v32 = vld [vmem:[#allocation2 + $0x30] ss:$8 sps:$4 sm:$0xff]   ;;  %v838_v34 = vld [vmem:[#allocation7 + $0x24] ss:$8 sps:$4 sm:$0xff]   ;;  %v840_v35 = vld [vmem:[#allocation7 + $0x20] ss:$8 sps:$4 sm:$0xff]  }
  0x35   :  { %474 = vmatprep.subr.bf16.mxu1 %v829_v20  ;;  %v837_v33 = vld [vmem:[#allocation7 + $0x30] ss:$8 sps:$4 sm:$0xff]   ;;  %v841_v36 = vld [vmem:[#allocation7 + $0x14] ss:$8 sps:$4 sm:$0xff]   ;;  %v844_v38 = vld [vmem:[#allocation7 + $0x4] ss:$8 sps:$4 sm:$0xff]  }
  0x36   :  { %v843_v37 = vld [vmem:[#allocation7 + $0x10] ss:$8 sps:$4 sm:$0xff]   ;;  %v846_v39 = vld [vmem:[#allocation7] ss:$8 sps:$4 sm:$0xff]  }
  0x37   :  { %752 = vmatpush3.bf16.msra.mxu0 %v802_v7  ;;  %v649_v44 = vld [vmem:[%s1038_s2] ss:$0 sm:$0xff]  ;;  %s963_s2 = smov [#allocation8]  }
  0x38   :  { %753 = vmatprep.subr.bf16.mxu0 %v803_v8  ;;  %475 = vmatpush1.bf16.msra.mxu1 %v831_v22  ;;  %s620_s15 = sshll.u32 %s963_s2, 4  ;;  %s621_s15 = int_to_ptr.vmem [resolvable:$true] %s620_s15 }
  0x39   :  { %476 = vmatprep.subr.bf16.mxu1 %v832_v24  ;;  %s907_s16 = scalar_lea.vmem %s621_s15, 512  ;;  %p912_p2 = scmp.lt.s32.totalorder %s621_s15, %s621_s15 }
  0x3a   :  { %p908_p1 = scmp.ne.s32.totalorder %s621_s15, %s907_s16  ;;  %p913_p3 = scmp.lt.s32.totalorder %s907_s16, %s907_s16 }
  0x3b   :  { %754 = vmatpush3.bf16.msra.mxu0 %v804_v9 }
  0x3c   :  { %755 = vmatprep.subr.bf16.mxu0 %v805_v10  ;;  %477 = vmatpush1.bf16.msra.mxu1 %v834_v26  ;;  %p914_p4 = por %p913_p3, %p912_p2 }
  0x3d   :  { %478 = vmatprep.subr.bf16.mxu1 %v835_v27 }
  0x3e   :  { %p915_p5 = pnand %p914_p4, %p908_p1 }
  0x3f   :  { %756 = vmatpush3.bf16.msra.mxu0 %v806_v12 }
  0x40   :  { %757 = vmatprep.subr.bf16.mxu0 %v807_v13  ;;  %479 = vmatpush1.bf16.msra.mxu1 %v837_v33 }
  0x41   :  { %480 = vmatprep.subr.bf16.mxu1 %v838_v34 }
  0x43   :  { %758 = vmatpush3.bf16.msra.mxu0 %v808_v16 }
  0x44   :  { %759 = vmatprep.subr.bf16.mxu0 %v809_v18  ;;  %481 = vmatpush1.bf16.msra.mxu1 %v840_v35 }
  0x45   :  { %482 = vmatprep.subr.bf16.mxu1 %v841_v36 }
  0x47   :  { %760 = vmatpush3.bf16.msra.mxu0 %v810_v21 }
  0x48   :  { %483 = vmatpush1.bf16.msra.mxu1 %v843_v37 }
  0x49   :  { %484 = vmatprep.subr.bf16.mxu1 %v844_v38 }
  0x4a   :  { %282 = vmatmul.mubr.bf16.vlgmr.msra.gmra.mxu0 %v811_v23 }
  0x4b   :  { %289 = vmatprep.mubr.bf16.mxu0 %v814_v25 }
  0x4c   :  { %485 = vmatpush1.bf16.msra.mxu1 %v846_v39 }
  0x52   :  { %290 = vmatmul.mubr.bf16.gmra.mxu0 %v816_v28 }
  0x53   :  { %297 = vmatprep.mubr.bf16.mxu0 %v817_v29 }
  0x5a   :  { %298 = vmatmul.mubr.bf16.gmra.mxu0 %v819_v30 }
  0x5b   :  { %305 = vmatprep.mubr.bf16.mxu0 %v820_v31 }
  0x62   :  { %306 = vmatmul.mubr.bf16.gmra.mxu0 %v822_v32 }
 0x10a   :  { %v761_v41 = vpop.f32.mrf.mxu0 }
 0x10c   :  { %v762_v42 = vpop.f32.mrf.mxu0 }
 0x10d   :  { %v763_v43 = vadd.f32 %v762_v42, %v761_v41 }
 0x10e   :  { %v764_v45 = vpop.f32.mrf.mxu0 }
 0x10f   :  { %v284_v47 = vadd.f32 %v763_v43, %v649_v44 }
 0x110   :  { %v765_v46 = vpop.f32.mrf.mxu0 }
 0x111   :  { %v766_v48 = vadd.f32 %v765_v46, %v764_v45  ;;  %v314_v52 = vmax.f32 %v284_v47, 0.0 }
 0x112   :  { %v767_v49 = vpop.f32.mrf.mxu0 }
 0x113   :  { %v287_v50 = vadd.f32 %v766_v48, %v649_v44 }
 0x114   :  { %v768_v51 = vpop.f32.mrf.mxu0 }
 0x115   :  { %v315_v53 = vmax.f32 %v287_v50, 0.0  ;;  %v769_v54 = vadd.f32 %v768_v51, %v767_v49 }
 0x116   :  { %v770_v55 = vpop.f32.mrf.mxu0 }
 0x117   :  { %v322_v56 = vpack.c.bf16 %v315_v53, %v314_v52  ;;  %v292_v58 = vadd.f32 %v769_v54, %v649_v44 }
 0x118   :  { %v771_v57 = vpop.f32.mrf.mxu0 }
 0x119   :  { %v772_v59 = vadd.f32 %v771_v57, %v770_v55  ;;  %726 = vst [vmem:[#allocation8] sm:$0xff] %v322_v56   ;;  %503 = vmatmul.mubr.bf16.vlgmr.msra.gmra.mxu1 %v322_v56  ;;  %v316_v63 = vmax.f32 %v292_v58, 0.0 }
 0x11a   :  { %v773_v60 = vpop.f32.mrf.mxu0  ;;  %512 = vmatprep.mubr.bf16.mxu1 %v962_v40 }
 0x11b   :  { %v295_v61 = vadd.f32 %v772_v59, %v649_v44 }
 0x11c   :  { %v774_v62 = vpop.f32.mrf.mxu0 }
 0x11d   :  { %v317_v0 = vmax.f32 %v295_v61, 0.0  ;;  %v775_v1 = vadd.f32 %v774_v62, %v773_v60 }
 0x11e   :  { %v776_v2 = vpop.f32.mrf.mxu0 }
 0x11f   :  { %v323_v3 = vpack.c.bf16 %v317_v0, %v316_v63  ;;  %v300_v5 = vadd.f32 %v775_v1, %v649_v44 }
 0x120   :  { %v777_v4 = vpop.f32.mrf.mxu0 }
 0x121   :  { %v778_v6 = vadd.f32 %v777_v4, %v776_v2  ;;  %742 = vst [vmem:[#allocation8 + $0x8] sm:$0xff] %v323_v3   ;;  %513 = vmatmul.mubr.bf16.gmra.mxu1 %v323_v3  ;;  %v318_v10 = vmax.f32 %v300_v5, 0.0 }
 0x122   :  { %v779_v7 = vpop.f32.mrf.mxu0  ;;  %522 = vmatprep.mubr.bf16.mxu1 %v962_v40 }
 0x123   :  { %v303_v8 = vadd.f32 %v778_v6, %v649_v44 }
 0x124   :  { %v780_v9 = vpop.f32.mrf.mxu0 }
 0x125   :  { %v319_v11 = vmax.f32 %v303_v8, 0.0  ;;  %v781_v12 = vadd.f32 %v780_v9, %v779_v7 }
 0x126   :  { %v782_v13 = vpop.f32.mrf.mxu0 }
 0x127   :  { %v324_v14 = vpack.c.bf16 %v319_v11, %v318_v10  ;;  %v308_v16 = vadd.f32 %v781_v12, %v649_v44 }
 0x128   :  { %v783_v15 = vpop.f32.mrf.mxu0 }
 0x129   :  { %v784_v17 = vadd.f32 %v783_v15, %v782_v13  ;;  %743 = vst [vmem:[#allocation8 + $0x10] sm:$0xff] %v324_v14   ;;  %523 = vmatmul.mubr.bf16.gmra.mxu1 %v324_v14  ;;  %v320_v19 = vmax.f32 %v308_v16, 0.0 }
 0x12a   :  { %532 = vmatprep.mubr.bf16.mxu1 %v962_v40 }
 0x12b   :  { %v311_v18 = vadd.f32 %v784_v17, %v649_v44 }
 0x12d   :  { %v321_v20 = vmax.f32 %v311_v18, 0.0 }
 0x12f   :  { %v325_v21 = vpack.c.bf16 %v321_v20, %v320_v19 }
 0x131   :  { %744 = vst [vmem:[#allocation8 + $0x18] sm:$0xff] %v325_v21   ;;  %533 = vmatmul.mubr.bf16.gmra.mxu1 %v325_v21 }
 0x132   :  { %918 = shalt.err (!%p915_p5)
}
 0x133   :  { %626 = dma.vmem_to_hbm [thread:$0]  %s621_s15, 512, %s1041_s5, [#allocation4], %s956_s24, %s956_s24, %s957_s25   ;;  %v380_v22 = vlaneseq }
 0x134   :  { %v378_v25 = vld [vmem:[%s1040_s4] sm:$0x3]  ;;  %s964_s4 = smov [#allocation9]  }
 0x135   :  { %v381_v23 = vshrl.u32 %v380_v22, 7  ;;  %s632_s5 = sshll.u32 %s964_s4, 4  ;;  %s633_s5 = int_to_ptr.vmem [resolvable:$true] %s632_s5 }
 0x136   :  { %s927_s21 = scalar_lea.vmem %s633_s5, 1024  ;;  %p932_p7 = scmp.lt.s32.totalorder %s633_s5, %s633_s5 }
 0x137   :  { %v382_v24 = vsub.s32 0, %v381_v23  ;;  %v386_v26 = vsub.s32 1, %v381_v23  ;;  %p928_p6 = scmp.ne.s32.totalorder %s633_s5, %s927_s21  ;;  %p933_p8 = scmp.lt.s32.totalorder %s927_s21, %s927_s21 }
 0x139   :  { %v383_v27 = vrot.slane %v378_v25, %v382_v24  ;;  %v387_v28 = vrot.slane %v378_v25, %v386_v26  ;;  %p934_p9 = por %p933_p8, %p932_p7 }
 0x13b   :  { %p935_p10 = pnand %p934_p9, %p928_p6 }
 0x1d9   :  { %v504_v29 = vpop.f32.mrf.mxu1 }
 0x1da   :  { %v505_v30 = vadd.f32 %v504_v29, %v383_v27 }
 0x1db   :  { %v506_v31 = vpop.f32.mrf.mxu1 }
 0x1dc   :  { %v507_v32 = vadd.f32 %v506_v31, %v387_v28  ;;  %v543_v34 = vmax.f32 %v505_v30, 0.0 }
 0x1dd   :  { %v508_v33 = vpop.f32.mrf.mxu1 }
 0x1de   :  { %v544_v35 = vmax.f32 %v507_v32, 0.0  ;;  %v509_v36 = vadd.f32 %v508_v33, %v383_v27 }
 0x1df   :  { %v510_v37 = vpop.f32.mrf.mxu1 }
 0x1e0   :  { %v714_v38 = vpack.c.bf16 %v544_v35, %v543_v34  ;;  %v511_v39 = vadd.f32 %v510_v37, %v387_v28  ;;  %v545_v41 = vmax.f32 %v509_v36, 0.0 }
 0x1e1   :  { %v514_v40 = vpop.f32.mrf.mxu1 }
 0x1e2   :  { %607 = vst [vmem:[#allocation9] sm:$0xff] %v714_v38  ;;  %v546_v42 = vmax.f32 %v511_v39, 0.0  ;;  %v515_v43 = vadd.f32 %v514_v40, %v383_v27 }
 0x1e3   :  { %v516_v44 = vpop.f32.mrf.mxu1 }
 0x1e4   :  { %v715_v45 = vpack.c.bf16 %v546_v42, %v545_v41  ;;  %v517_v46 = vadd.f32 %v516_v44, %v387_v28  ;;  %v547_v48 = vmax.f32 %v515_v43, 0.0 }
 0x1e5   :  { %v518_v47 = vpop.f32.mrf.mxu1 }
 0x1e6   :  { %608 = vst [vmem:[#allocation9 + $0x8] sm:$0xff] %v715_v45  ;;  %v548_v49 = vmax.f32 %v517_v46, 0.0  ;;  %v519_v50 = vadd.f32 %v518_v47, %v383_v27 }
 0x1e7   :  { %v520_v51 = vpop.f32.mrf.mxu1 }
 0x1e8   :  { %v716_v52 = vpack.c.bf16 %v548_v49, %v547_v48  ;;  %v521_v53 = vadd.f32 %v520_v51, %v387_v28  ;;  %v549_v55 = vmax.f32 %v519_v50, 0.0 }
 0x1e9   :  { %v524_v54 = vpop.f32.mrf.mxu1 }
 0x1ea   :  { %609 = vst [vmem:[#allocation9 + $0x10] sm:$0xff] %v716_v52  ;;  %v550_v56 = vmax.f32 %v521_v53, 0.0  ;;  %v525_v57 = vadd.f32 %v524_v54, %v383_v27 }
 0x1eb   :  { %v526_v58 = vpop.f32.mrf.mxu1 }
 0x1ec   :  { %v717_v59 = vpack.c.bf16 %v550_v56, %v549_v55  ;;  %v527_v60 = vadd.f32 %v526_v58, %v387_v28  ;;  %v551_v62 = vmax.f32 %v525_v57, 0.0 }
 0x1ed   :  { %v528_v61 = vpop.f32.mrf.mxu1 }
 0x1ee   :  { %610 = vst [vmem:[#allocation9 + $0x18] sm:$0xff] %v717_v59  ;;  %v552_v63 = vmax.f32 %v527_v60, 0.0  ;;  %v529_v0 = vadd.f32 %v528_v61, %v383_v27 }
 0x1ef   :  { %v530_v1 = vpop.f32.mrf.mxu1 }
 0x1f0   :  { %v718_v2 = vpack.c.bf16 %v552_v63, %v551_v62  ;;  %v531_v3 = vadd.f32 %v530_v1, %v387_v28  ;;  %v553_v5 = vmax.f32 %v529_v0, 0.0 }
 0x1f1   :  { %v534_v4 = vpop.f32.mrf.mxu1 }
 0x1f2   :  { %611 = vst [vmem:[#allocation9 + $0x20] sm:$0xff] %v718_v2  ;;  %v554_v6 = vmax.f32 %v531_v3, 0.0  ;;  %v535_v7 = vadd.f32 %v534_v4, %v383_v27 }
 0x1f3   :  { %v536_v8 = vpop.f32.mrf.mxu1 }
 0x1f4   :  { %v719_v9 = vpack.c.bf16 %v554_v6, %v553_v5  ;;  %v537_v10 = vadd.f32 %v536_v8, %v387_v28  ;;  %v555_v12 = vmax.f32 %v535_v7, 0.0 }
 0x1f5   :  { %v538_v11 = vpop.f32.mrf.mxu1 }
 0x1f6   :  { %612 = vst [vmem:[#allocation9 + $0x28] sm:$0xff] %v719_v9  ;;  %v556_v13 = vmax.f32 %v537_v10, 0.0  ;;  %v539_v14 = vadd.f32 %v538_v11, %v383_v27 }
 0x1f7   :  { %v540_v15 = vpop.f32.mrf.mxu1 }
 0x1f8   :  { %v720_v16 = vpack.c.bf16 %v556_v13, %v555_v12  ;;  %v541_v17 = vadd.f32 %v540_v15, %v387_v28  ;;  %v557_v18 = vmax.f32 %v539_v14, 0.0 }
 0x1fa   :  { %613 = vst [vmem:[#allocation9 + $0x30] sm:$0xff] %v720_v16  ;;  %v558_v19 = vmax.f32 %v541_v17, 0.0 }
 0x1fc   :  { %v721_v20 = vpack.c.bf16 %v558_v19, %v557_v18 }
 0x1fe   :  { %614 = vst [vmem:[#allocation9 + $0x38] sm:$0xff] %v721_v20 }
 0x1ff   :  { %938 = shalt.err (!%p935_p10)
}
 0x200   :  { %638 = dma.vmem_to_hbm [thread:$0]  %s633_s5, 1024, %s1042_s6, [#allocation10], %s959_s7, %s959_s7, %s960_s8  }
 0x201   :  { %951 = dma.done.wait [#allocation4], 512  }
 0x202   :  { %952 = vsyncadd [#allocation4], 4294966784 }
 0x203   :  { %953 = dma.done.wait [#allocation10], 1024  }
 0x204   :  { %954 = vsyncadd [#allocation10], 4294966272 }
 0x205   :  { %645 = vsyncpa [#allocation3], 1 }
 0x206   :  { %646 = vsyncpa [#allocation6], 1 }
 0x207   :  { %647 = vsyncpa [#allocation4], 1 }
 0x208   :  { %648 = vsyncpa [#allocation10], 1 }

</bundles_post_ra>
